<compile_context>
chip_gen: v6e
topology: v6e:2x2x1
jax: 0.10.0
libtpu: 0.0.40
codegen_flags: <defaults>
</compile_context>

<pallas_src>
import functools

import jax
import jax.numpy as jnp
from jax import lax
from jax.experimental import pallas as pl
from jax.experimental.pallas import tpu as pltpu

_NEG_PAD = -1e4                   # sigmoid -> 0, softplus -> 0, x*0 finite
_LANE = 128
_SUBLANE = 8
_BLOCK_ELEM_BUDGET = 512 * 1024   # ~2 MiB of f32 per logits block per grid step
_MAX_TS = 16 * 1024               # cap on lane (spatial) tile
_MAX_TR = 1024                    # cap on sublane (row) tile


def _round_up(x, m):
    return (x + m - 1) // m * m


def _cdiv(a, b):
    return -(-a // b)


def _min_sublane(dtype):
    # f32 -> 8, bf16 -> 16, int8 -> 32 (native (sublane,128) tile per dtype).
    return max(_SUBLANE, (4 * _SUBLANE) // jnp.dtype(dtype).itemsize)


def _choose_split(nc, s, tr_min):
    """Split spatial into K pseudo-rows so the parallel row axis can have >=2
    blocks (v7x has 2 TensorCores; only the 'parallel' axis shards)."""
    k = 1
    while (nc * k < 2 * tr_min and k < 16
           and s % (2 * k) == 0 and s // (2 * k) >= _LANE):
        k *= 2
    return k


def _choose_tiles(nc, s, tr_min):
    """Pick (row_tile, spatial_tile) aligned to (tr_min, 128) within budget."""
    s_aligned = _round_up(max(s, 1), _LANE)
    if s_aligned <= _MAX_TS:
        ts = s_aligned
    else:
        k = _cdiv(s_aligned, _MAX_TS)               # number of spatial chunks
        ts = _round_up(_cdiv(s_aligned, k), _LANE)  # minimal implicit tail
    tr = (_BLOCK_ELEM_BUDGET // ts) // tr_min * tr_min
    tr = max(tr_min, min(tr, _MAX_TR))
    if nc >= 2 * tr_min:
        # Keep at least two row blocks so the parallel axis can shard.
        tr = min(tr, _round_up(_cdiv(nc, 2), tr_min))
    tr = min(tr, _round_up(nc, tr_min))
    return tr, ts


def _dice_bce_kernel(p_ref, t_ref, inter_ref, xsum_ref, ysum_ref, bce_ref, *,
                     tail_cols, block_cols):
    j = pl.program_id(1)

    @pl.when(j == 0)
    def _():
        inter_ref[...] = jnp.zeros_like(inter_ref)
        xsum_ref[...] = jnp.zeros_like(xsum_ref)
        ysum_ref[...] = jnp.zeros_like(ysum_ref)
        bce_ref[...] = jnp.zeros_like(bce_ref)

    def accumulate(x, y):
        # Shared transcendental: a = exp(-|x|) serves both sigmoid & softplus.
        a = jnp.exp(-jnp.abs(x))
        # BCE-with-logits (stable): max(x,0) - x*y + log(1 + exp(-|x|)).
        bce = jnp.maximum(x, 0.0) - x * y + jnp.log1p(a)
        bce_ref[...] += jnp.sum(bce, axis=1, keepdims=True)
        ysum_ref[...] += jnp.sum(y, axis=1, keepdims=True)
        # sigmoid(x): EUP reciprocal + one Newton step (no VPU divide chain).
        d = 1.0 + a
        r0 = pl.reciprocal(d, approx=True)
        r = r0 * (2.0 - d * r0)
        sx = jnp.where(x >= 0.0, 1.0, a) * r
        xsum_ref[...] += jnp.sum(sx, axis=1, keepdims=True)
        inter_ref[...] += jnp.sum(sx * y, axis=1, keepdims=True)

    x = p_ref[...].astype(jnp.float32)   # (TR, TS) logits
    y = t_ref[...].astype(jnp.float32)   # (TR, TS) targets in {0,1}

    if tail_cols != block_cols:
        # Static: the spatial extent does not divide the block; only the LAST
        # spatial block pays the masking cost (garbage columns are replaced by
        # -1e4 logits / 0 targets BEFORE exp/log1p so they contribute 0).
        last_j = pl.num_programs(1) - 1

        @pl.when(j != last_j)
        def _():
            accumulate(x, y)

        @pl.when(j == last_j)
        def _():
            col = lax.broadcasted_iota(jnp.int32, x.shape, 1)
            ok = col < tail_cols
            accumulate(jnp.where(ok, x, _NEG_PAD), jnp.where(ok, y, 0.0))
    else:
        accumulate(x, y)


def dice_bce_loss(p, t, *, dice_weight=1.0, bce_weight=1.0, smooth=1e-5):
    """p: logits (N, C, *spatial); t: targets (same shape). Returns dict of scalars."""
    assert p.shape == t.shape, f"{p.shape} vs {t.shape}"
    n, c = p.shape[0], p.shape[1]
    nc = n * c
    s = 1
    for d in p.shape[2:]:
        s *= d

    # Hard labels ({0,1} bool/int) travel as int8 -> 1 B/elem of HBM traffic.
    # Soft (floating) labels keep their dtype (bf16 stays bf16).
    if not jnp.issubdtype(t.dtype, jnp.floating):
        t = t.astype(jnp.int8)

    p2 = p.reshape(nc, s)
    t2 = t.reshape(nc, s)

    tr_min = max(_min_sublane(p2.dtype), _min_sublane(t2.dtype))

    # Free (contiguous) reshape into K pseudo-rows; raw partials are additive
    # across the split, so the epilogue just folds them back.
    k_split = _choose_split(nc, s, tr_min)
    nc_eff, s_eff = nc * k_split, s // k_split
    if k_split > 1:
        p2 = p2.reshape(nc_eff, s_eff)
        t2 = t2.reshape(nc_eff, s_eff)

    tr, ts = _choose_tiles(nc_eff, s_eff, tr_min)
    grid = (_cdiv(nc_eff, tr), _cdiv(s_eff, ts))
    rows_out = grid[0] * tr
    tail_cols = s_eff - (grid[1] - 1) * ts   # valid columns in the last block

    kernel = functools.partial(_dice_bce_kernel,
                               tail_cols=tail_cols, block_cols=ts)

    row_spec = pl.BlockSpec((tr, 1), lambda i, j: (i, 0))
    out_sds = jax.ShapeDtypeStruct((rows_out, 1), jnp.float32)

    inter_r, xsum_r, ysum_r, bsum_r = pl.pallas_call(
        kernel,
        out_shape=(out_sds, out_sds, out_sds, out_sds),
        grid_spec=pltpu.PrefetchScalarGridSpec(
            num_scalar_prefetch=0,
            grid=grid,
            in_specs=[
                pl.BlockSpec((tr, ts), lambda i, j: (i, j)),
                pl.BlockSpec((tr, ts), lambda i, j: (i, j)),
            ],
            out_specs=[row_spec, row_spec, row_spec, row_spec],
        ),
        compiler_params=pltpu.CompilerParams(
            dimension_semantics=("parallel", "arbitrary"),
            vmem_limit_bytes=32 * 1024 * 1024),
    )(p2, t2)

    # Tiny JAX epilogue: fold pseudo-rows, drop padded rows, apply dice / BCE.
    def _fold(rows):
        return rows[:nc_eff, 0].reshape(nc, k_split).sum(axis=1)

    inter = _fold(inter_r)
    xsum = _fold(xsum_r)
    ysum = _fold(ysum_r)
    bce_sum = _fold(bsum_r)

    dice = -(2.0 * inter + smooth) / (xsum + ysum + smooth)
    dice_loss = jnp.mean(dice)
    bce_loss = jnp.mean(bce_sum / float(s))
    loss = dice_weight * dice_loss + bce_weight * bce_loss
    return {"dice_loss": dice_loss, "bce_loss": bce_loss, "loss": loss}


def _reference(p, t, *, dice_weight=1.0, bce_weight=1.0, smooth=1e-5):
    """Plain-JAX restatement of the PyTorch forward for verification."""
    p = p.astype(jnp.float32)
    t = t.astype(jnp.float32)
    n, c = p.shape[0], p.shape[1]
    pf = p.reshape(n, c, -1)
    tf = t.reshape(n, c, -1)
    sx = jax.nn.sigmoid(pf)
    inter = jnp.sum(sx * tf, axis=2)
    xsum = jnp.sum(sx, axis=2)
    ysum = jnp.sum(tf, axis=2)
    dice = jnp.mean(-(2.0 * inter + smooth) / (xsum + ysum + smooth))
    bce = jnp.maximum(pf, 0.0) - pf * tf + jnp.log1p(jnp.exp(-jnp.abs(pf)))
    bce = jnp.mean(jnp.mean(bce, axis=2))
    return dice, bce, dice_weight * dice + bce_weight * bce


def _assert_close(name, got, want, atol=1e-5, rtol=5e-4):
    assert jnp.allclose(got, want, atol=atol, rtol=rtol), (name, got, want)


if __name__ == "__main__":
    key = jax.random.PRNGKey(0)
    kp, kt, kp2, kt2 = jax.random.split(key, 4)

    loss_fn = jax.jit(dice_bce_loss)

    # Case 1: f32 logits, hard bool labels (exercises int8 target path and the
    # pseudo-row spatial split; spatial is lane-aligned -> no masking branch).
    N, C, H, W = 2, 4, 16, 16
    logits = jax.random.normal(kp, (N, C, H, W), dtype=jnp.float32)
    targets = jax.random.bernoulli(kt, 0.3, (N, C, H, W))
    out = loss_fn(logits, targets)
    out = jax.tree_util.tree_map(jax.block_until_ready, out)
    ref_dice, ref_bce, ref_loss = _reference(
        logits, targets.astype(jnp.float32))
    _assert_close("dice", out["dice_loss"], ref_dice)
    _assert_close("bce", out["bce_loss"], ref_bce)
    _assert_close("loss", out["loss"], ref_loss)

    # Case 2: bf16 logits + bf16 (soft-capable) targets with non-aligned,
    # non-divisible spatial extent -> exercises the in-kernel ragged-tail
    # masking path and native bf16 feeding with in-kernel f32 cast.
    N2, C2, H2, W2 = 2, 3, 10, 13
    logits2 = jax.random.normal(
        kp2, (N2, C2, H2, W2), dtype=jnp.float32).astype(jnp.bfloat16)
    targets2 = jax.random.bernoulli(
        kt2, 0.4, (N2, C2, H2, W2)).astype(jnp.bfloat16)
    out2 = loss_fn(logits2, targets2)
    out2 = jax.tree_util.tree_map(jax.block_until_ready, out2)
    ref2_dice, ref2_bce, ref2_loss = _reference(logits2, targets2)
    _assert_close("dice2", out2["dice_loss"], ref2_dice)
    _assert_close("bce2", out2["bce_loss"], ref2_bce)
    _assert_close("loss2", out2["loss"], ref2_loss)

    print("KERNEL_OK")
</pallas_src>

<mosaic_0001>
module attributes {stable_mosaic.version = 11 : i64} {
  func.func @_dice_bce_kernel(%arg0: i32, %arg1: i32, %arg2: memref<32x128xf32, #tpu.memory_space<vmem>>, %arg3: memref<32x128xi8, #tpu.memory_space<vmem>>, %arg4: memref<32x1xf32, #tpu.memory_space<vmem>>, %arg5: memref<32x1xf32, #tpu.memory_space<vmem>>, %arg6: memref<32x1xf32, #tpu.memory_space<vmem>>, %arg7: memref<32x1xf32, #tpu.memory_space<vmem>>) attributes {dimension_semantics = [#tpu.dimension_semantics<parallel>, #tpu.dimension_semantics<arbitrary>], iteration_bounds = array<i64: 1, 1>, scalar_prefetch = 0 : i64, scratch_operands = 0 : i64, tpu.core_type = #tpu.core_type<tc>, window_params = [{transform_indices = @transform_0, window_bounds = array<i64: 32, 128>}, {transform_indices = @transform_1, window_bounds = array<i64: 32, 128>}, {transform_indices = @transform_2, window_bounds = array<i64: 32, 1>}, {transform_indices = @transform_3, window_bounds = array<i64: 32, 1>}, {transform_indices = @transform_4, window_bounds = array<i64: 32, 1>}, {transform_indices = @transform_5, window_bounds = array<i64: 32, 1>}]} {
    %c0_i32 = arith.constant 0 : i32
    %0 = arith.cmpi eq, %arg1, %c0_i32 : i32
    %1 = arith.extui %0 : i1 to i32
    %c0_i32_0 = arith.constant 0 : i32
    %2 = arith.cmpi ne, %1, %c0_i32_0 : i32
    scf.if %2 {
      %cst_29 = arith.constant 0.000000e+00 : f32
      %49 = vector.broadcast %cst_29 : f32 to vector<32x1xf32>
      %c0_30 = arith.constant 0 : index
      %c0_31 = arith.constant 0 : index
      %50 = vector.load %arg4[%c0_30, %c0_31] : memref<32x1xf32, #tpu.memory_space<vmem>>, vector<32x1xf32>
      tpu.vector_store %arg4[%c0_30, %c0_31], %49 {strides = array<i32>} : memref<32x1xf32, #tpu.memory_space<vmem>>, vector<32x1xf32>,
      %cst_32 = arith.constant 0.000000e+00 : f32
      %51 = vector.broadcast %cst_32 : f32 to vector<32x1xf32>
      %c0_33 = arith.constant 0 : index
      %c0_34 = arith.constant 0 : index
      %52 = vector.load %arg5[%c0_33, %c0_34] : memref<32x1xf32, #tpu.memory_space<vmem>>, vector<32x1xf32>
      tpu.vector_store %arg5[%c0_33, %c0_34], %51 {strides = array<i32>} : memref<32x1xf32, #tpu.memory_space<vmem>>, vector<32x1xf32>,
      %cst_35 = arith.constant 0.000000e+00 : f32
      %53 = vector.broadcast %cst_35 : f32 to vector<32x1xf32>
      %c0_36 = arith.constant 0 : index
      %c0_37 = arith.constant 0 : index
      %54 = vector.load %arg6[%c0_36, %c0_37] : memref<32x1xf32, #tpu.memory_space<vmem>>, vector<32x1xf32>
      tpu.vector_store %arg6[%c0_36, %c0_37], %53 {strides = array<i32>} : memref<32x1xf32, #tpu.memory_space<vmem>>, vector<32x1xf32>,
      %cst_38 = arith.constant 0.000000e+00 : f32
      %55 = vector.broadcast %cst_38 : f32 to vector<32x1xf32>
      %c0_39 = arith.constant 0 : index
      %c0_40 = arith.constant 0 : index
      %56 = vector.load %arg7[%c0_39, %c0_40] : memref<32x1xf32, #tpu.memory_space<vmem>>, vector<32x1xf32>
      tpu.vector_store %arg7[%c0_39, %c0_40], %55 {strides = array<i32>} : memref<32x1xf32, #tpu.memory_space<vmem>>, vector<32x1xf32>,
    } else {
    }
    %c0 = arith.constant 0 : index
    %c0_1 = arith.constant 0 : index
    %3 = vector.load %arg2[%c0, %c0_1] : memref<32x128xf32, #tpu.memory_space<vmem>>, vector<32x128xf32>
    %c0_2 = arith.constant 0 : index
    %c0_3 = arith.constant 0 : index
    %4 = vector.load %arg3[%c0_2, %c0_3] : memref<32x128xi8, #tpu.memory_space<vmem>>, vector<32x128xi8>
    %5 = arith.sitofp %4 : vector<32x128xi8> to vector<32x128xf32>
    %6 = math.absf %3 : vector<32x128xf32>
    %cst = arith.constant 0.000000e+00 : f32
    %7 = vector.broadcast %cst : f32 to vector<32x128xf32>
    %8 = arith.subf %7, %6 : vector<32x128xf32>
    %9 = math.exp %8 : vector<32x128xf32>
    %cst_4 = arith.constant 0.000000e+00 : f32
    %10 = vector.broadcast %cst_4 : f32 to vector<32x128xf32>
    %11 = arith.maximumf %3, %10 : vector<32x128xf32>
    %12 = arith.mulf %3, %5 : vector<32x128xf32>
    %13 = arith.subf %11, %12 : vector<32x128xf32>
    %14 = math.log1p %9 : vector<32x128xf32>
    %15 = arith.addf %13, %14 : vector<32x128xf32>
    %c0_5 = arith.constant 0 : index
    %c0_6 = arith.constant 0 : index
    %16 = vector.load %arg7[%c0_5, %c0_6] : memref<32x1xf32, #tpu.memory_space<vmem>>, vector<32x1xf32>
    %cst_7 = arith.constant dense<0.000000e+00> : vector<32xf32>
    %17 = vector.multi_reduction <add>, %15, %cst_7 [1] : vector<32x128xf32> to vector<32xf32>
    %18 = vector.shape_cast %17 : vector<32xf32> to vector<32x1xf32>
    %19 = arith.addf %16, %18 : vector<32x1xf32>
    %c0_8 = arith.constant 0 : index
    %c0_9 = arith.constant 0 : index
    %20 = vector.load %arg7[%c0_8, %c0_9] : memref<32x1xf32, #tpu.memory_space<vmem>>, vector<32x1xf32>
    tpu.vector_store %arg7[%c0_8, %c0_9], %19 {strides = array<i32>} : memref<32x1xf32, #tpu.memory_space<vmem>>, vector<32x1xf32>,
    %c0_10 = arith.constant 0 : index
    %c0_11 = arith.constant 0 : index
    %21 = vector.load %arg6[%c0_10, %c0_11] : memref<32x1xf32, #tpu.memory_space<vmem>>, vector<32x1xf32>
    %cst_12 = arith.constant dense<0.000000e+00> : vector<32xf32>
    %22 = vector.multi_reduction <add>, %5, %cst_12 [1] : vector<32x128xf32> to vector<32xf32>
    %23 = vector.shape_cast %22 : vector<32xf32> to vector<32x1xf32>
    %24 = arith.addf %21, %23 : vector<32x1xf32>
    %c0_13 = arith.constant 0 : index
    %c0_14 = arith.constant 0 : index
    %25 = vector.load %arg6[%c0_13, %c0_14] : memref<32x1xf32, #tpu.memory_space<vmem>>, vector<32x1xf32>
    tpu.vector_store %arg6[%c0_13, %c0_14], %24 {strides = array<i32>} : memref<32x1xf32, #tpu.memory_space<vmem>>, vector<32x1xf32>,
    %cst_15 = arith.constant 1.000000e+00 : f32
    %26 = vector.broadcast %cst_15 : f32 to vector<32x128xf32>
    %27 = arith.addf %26, %9 : vector<32x128xf32>
    %28 = tpu.reciprocal %27 {approx = true} : vector<32x128xf32> -> vector<32x128xf32>
    %29 = arith.mulf %27, %28 : vector<32x128xf32>
    %cst_16 = arith.constant 2.000000e+00 : f32
    %30 = vector.broadcast %cst_16 : f32 to vector<32x128xf32>
    %31 = arith.subf %30, %29 : vector<32x128xf32>
    %32 = arith.mulf %28, %31 : vector<32x128xf32>
    %cst_17 = arith.constant 0.000000e+00 : f32
    %33 = vector.broadcast %cst_17 : f32 to vector<32x128xf32>
    %34 = arith.cmpf oge, %3, %33 : vector<32x128xf32>
    %cst_18 = arith.constant 1.000000e+00 : f32
    %35 = vector.broadcast %cst_18 : f32 to vector<32x128xf32>
    %36 = arith.select %34, %35, %9 : vector<32x128xi1>, vector<32x128xf32>
    %37 = arith.mulf %36, %32 : vector<32x128xf32>
    %c0_19 = arith.constant 0 : index
    %c0_20 = arith.constant 0 : index
    %38 = vector.load %arg5[%c0_19, %c0_20] : memref<32x1xf32, #tpu.memory_space<vmem>>, vector<32x1xf32>
    %cst_21 = arith.constant dense<0.000000e+00> : vector<32xf32>
    %39 = vector.multi_reduction <add>, %37, %cst_21 [1] : vector<32x128xf32> to vector<32xf32>
    %40 = vector.shape_cast %39 : vector<32xf32> to vector<32x1xf32>
    %41 = arith.addf %38, %40 : vector<32x1xf32>
    %c0_22 = arith.constant 0 : index
    %c0_23 = arith.constant 0 : index
    %42 = vector.load %arg5[%c0_22, %c0_23] : memref<32x1xf32, #tpu.memory_space<vmem>>, vector<32x1xf32>
    tpu.vector_store %arg5[%c0_22, %c0_23], %41 {strides = array<i32>} : memref<32x1xf32, #tpu.memory_space<vmem>>, vector<32x1xf32>,
    %c0_24 = arith.constant 0 : index
    %c0_25 = arith.constant 0 : index
    %43 = vector.load %arg4[%c0_24, %c0_25] : memref<32x1xf32, #tpu.memory_space<vmem>>, vector<32x1xf32>
    %44 = arith.mulf %37, %5 : vector<32x128xf32>
    %cst_26 = arith.constant dense<0.000000e+00> : vector<32xf32>
    %45 = vector.multi_reduction <add>, %44, %cst_26 [1] : vector<32x128xf32> to vector<32xf32>
    %46 = vector.shape_cast %45 : vector<32xf32> to vector<32x1xf32>
    %47 = arith.addf %43, %46 : vector<32x1xf32>
    %c0_27 = arith.constant 0 : index
    %c0_28 = arith.constant 0 : index
    %48 = vector.load %arg4[%c0_27, %c0_28] : memref<32x1xf32, #tpu.memory_space<vmem>>, vector<32x1xf32>
    tpu.vector_store %arg4[%c0_27, %c0_28], %47 {strides = array<i32>} : memref<32x1xf32, #tpu.memory_space<vmem>>, vector<32x1xf32>,
    return
  }
  func.func @transform_0(%arg0: i32, %arg1: i32) -> (i32, i32) {
    %c0_i32 = arith.constant 0 : i32
    return %arg0, %arg1 : i32, i32
  }
  func.func @transform_1(%arg0: i32, %arg1: i32) -> (i32, i32) {
    %c0_i32 = arith.constant 0 : i32
    return %arg0, %arg1 : i32, i32
  }
  func.func @transform_2(%arg0: i32, %arg1: i32) -> (i32, i32) {
    %c0_i32 = arith.constant 0 : i32
    %c0_i32_0 = arith.constant 0 : i32
    return %arg0, %c0_i32 : i32, i32
  }
  func.func @transform_3(%arg0: i32, %arg1: i32) -> (i32, i32) {
    %c0_i32 = arith.constant 0 : i32
    %c0_i32_0 = arith.constant 0 : i32
    return %arg0, %c0_i32 : i32, i32
  }
  func.func @transform_4(%arg0: i32, %arg1: i32) -> (i32, i32) {
    %c0_i32 = arith.constant 0 : i32
    %c0_i32_0 = arith.constant 0 : i32
    return %arg0, %c0_i32 : i32, i32
  }
  func.func @transform_5(%arg0: i32, %arg1: i32) -> (i32, i32) {
    %c0_i32 = arith.constant 0 : i32
    %c0_i32_0 = arith.constant 0 : i32
    return %arg0, %c0_i32 : i32, i32
  }
}

</mosaic_0001>

<bundles_post_ra>
// kernel: squeeze.5
= control target key start
LH: loop header
LB: loop body
LE: loop exit
PB: predicated region body
PF: predicated region fallthrough
CT: control target
= control target key end

     0   :  { %s67_s8 = smov 122   ;;  %vm8_vm0 = vcmask 15360   ;;  %s68_s11 = smov 124   ;;  %s118_s0 = inlined_call_operand.vmem [shape: f32[16], index: 0, kind: input, shape index: {}]   ;;  %s119_s1 = inlined_call_operand.vmem [shape: f32[8,2], index: 1, kind: output, shape index: {}]  }
   0x1   :  { %v5_v0 = vld [vmem:[%s118_s0] sm:$0x1]  ;;  %s66_s0 = smov 126   ;;  %s69_s12 = smov 120  }
   0x2   :  { %6 = vst [vmem:[#allocation0] sm:$0x1] %v5_v0  ;;  %s70_s13 = smov 118   ;;  %s71_s14 = smov 116  }
   0x3   :  { %s72_s15 = smov 114  }
   0x9   :  { %v10_v1 = vld [vmem:[#allocation0] sm:$0x1]  }
   0xa   :  { %v22_v2 = vld [vmem:[#allocation0] sm:$0x1]   ;;  %11 = vrot.lane.b32.xlu0 %v10_v1, %s66_s0 }
   0xb   :  { %23 = vrot.lane.b32.xlu1 %v22_v2, %s67_s8  ;;  %v16_v3 = vld [vmem:[#allocation0] sm:$0x1]  }
   0xc   :  { %v28_v4 = vld [vmem:[#allocation0] sm:$0x1]  }
   0xd   :  { %v7_v5 = vld [vmem:[#allocation0] sm:$0x1]  }
   0xe   :  { %9 = vst.msk [vmem:[%s119_s1] sm:$0x1] %vm8_vm0, %v7_v5   ;;  %17 = vrot.lane.b32.xlu0 %v16_v3, %s68_s11  ;;  %v34_v6 = vld [vmem:[#allocation0] sm:$0x1]  }
   0xf   :  { %29 = vrot.lane.b32.xlu1 %v28_v4, %s69_s12  ;;  %v40_v7 = vld [vmem:[#allocation0] sm:$0x1]  }
  0x10   :  { %v46_v8 = vld [vmem:[#allocation0] sm:$0x1]  }
  0x12   :  { %35 = vrot.lane.b32.xlu0 %v34_v6, %s70_s13 }
  0x13   :  { %41 = vrot.lane.b32.xlu1 %v40_v7, %s71_s14 }
  0x16   :  { %47 = vrot.lane.b32.xlu0 %v46_v8, %s72_s15 }
  0x7c   :  { %v12_v9 = vpop.permute.xlu0 %11  }
  0x7d   :  { %v24_v10 = vpop.permute.xlu1 %23   ;;  %52 = vst.msk [vmem:[%s119_s1 + $0x1] sm:$0x1] %vm8_vm0, %v12_v9  }
  0x7e   :  { %54 = vst.msk [vmem:[%s119_s1 + $0x3] sm:$0x1] %vm8_vm0, %v24_v10  }
  0x80   :  { %v18_v11 = vpop.permute.xlu0 %17  }
  0x81   :  { %v30_v12 = vpop.permute.xlu1 %29   ;;  %53 = vst.msk [vmem:[%s119_s1 + $0x2] sm:$0x1] %vm8_vm0, %v18_v11  }
  0x82   :  { %55 = vst.msk [vmem:[%s119_s1 + $0x4] sm:$0x1] %vm8_vm0, %v30_v12  }
  0x84   :  { %v36_v13 = vpop.permute.xlu0 %35  }
  0x85   :  { %v42_v14 = vpop.permute.xlu1 %41   ;;  %56 = vst.msk [vmem:[%s119_s1 + $0x5] sm:$0x1] %vm8_vm0, %v36_v13  }
  0x86   :  { %57 = vst.msk [vmem:[%s119_s1 + $0x6] sm:$0x1] %vm8_vm0, %v42_v14  }
  0x88   :  { %v48_v15 = vpop.permute.xlu0 %47  }
  0x89   :  { %58 = vst.msk [vmem:[%s119_s1 + $0x7] sm:$0x1] %vm8_vm0, %v48_v15  }

// kernel: dice_bce_loss.1
= control target key start
LH: loop header
LB: loop body
LE: loop exit
PB: predicated region body
PF: predicated region fallthrough
CT: control target
= control target key end

     0   :  { %vm19_vm0 = vcmask 7168   ;;  %v287_v3 = vmov 0.0   ;;  %s624_s1 = inlined_call_operand.vmem [shape: s8[16,128], index: 1, kind: input, shape index: {}]   ;;  %s625_s0 = inlined_call_operand.vmem [shape: f32[16,128], index: 0, kind: input, shape index: {}]   ;;  %s626_s4 = inlined_call_operand.vmem [shape: f32[32,1], index: 4, kind: output, shape index: {2}]   ;;  %s627_s5 = inlined_call_operand.vmem [shape: f32[32,1], index: 5, kind: output, shape index: {3}]   ;;  %s628_s3 = inlined_call_operand.vmem [shape: f32[32,1], index: 3, kind: output, shape index: {1}]   ;;  %s629_s2 = inlined_call_operand.vmem [shape: f32[32,1], index: 2, kind: output, shape index: {0}]  }
   0x1   :  { %v254_v0 = vld [vmem:[%s624_s1] sm:$0xff]   ;;  %v324_v1 = vld [vmem:[%s625_s0 + $0x10] sm:$0xff]  ;;  %29 = vst.msk [vmem:[%s626_s4 + $0x8] sm:$0xff] %vm19_vm0, %v287_v3  ;;  %28 = vst.msk [vmem:[%s626_s4] sm:$0xff] %vm19_vm0, %v287_v3 }
   0x2   :  { %v329_v2 = vld [vmem:[%s625_s0] sm:$0xff]  ;;  %30 = vst.msk [vmem:[%s626_s4 + $0x10] sm:$0xff] %vm19_vm0, %v287_v3  ;;  %31 = vst.msk [vmem:[%s626_s4 + $0x18] sm:$0xff] %vm19_vm0, %v287_v3  ;;  %v256_v4 = vunpack.c.1.s8 %v254_v0  ;;  %v255_v5 = vunpack.c.0.s8 %v254_v0  ;;  %v260_v6 = vunpack.c.3.s8 %v254_v0  ;;  %v354_v7 = vld [vmem:[%s625_s0 + $0x18] sm:$0xff]  ;;  %v54_v8 = vand.u32 2147483647, %v324_v1 }
   0x3   :  { %v52_v9 = vand.u32 2147483647, %v329_v2  ;;  %v361_v10 = vld [vmem:[%s625_s0 + $0x8] sm:$0xff]  ;;  %v259_v13 = vunpack.c.2.s8 %v254_v0  ;;  %v55_v16 = vand.u32 2147483647, %v354_v7  ;;  %34 = vst.msk [vmem:[%s627_s5 + $0x10] sm:$0xff] %vm19_vm0, %v287_v3 }
   0x4   :  { %v363_v11 = vcvt.s32.f32 %v256_v4  ;;  %v365_v12 = vcvt.s32.f32 %v255_v5  ;;  %v58_v14 = vsub.f32 0.0, %v54_v8  ;;  %v370_v17 = vcvt.s32.f32 %v260_v6  ;;  %32 = vst.msk [vmem:[%s627_s5] sm:$0xff] %vm19_vm0, %v287_v3  ;;  %33 = vst.msk [vmem:[%s627_s5 + $0x8] sm:$0xff] %vm19_vm0, %v287_v3 }
   0x5   :  { %v56_v15 = vsub.f32 0.0, %v52_v9  ;;  %v53_v18 = vand.u32 2147483647, %v361_v10  ;;  %v59_v21 = vsub.f32 0.0, %v55_v16  ;;  %v373_v22 = vcvt.s32.f32 %v259_v13  ;;  %35 = vst.msk [vmem:[%s627_s5 + $0x18] sm:$0xff] %vm19_vm0, %v287_v3  ;;  %25 = vst.msk [vmem:[%s628_s3 + $0x8] sm:$0xff] %vm19_vm0, %v287_v3 }
   0x6   :  { %147 = vadd.xlane.f32.xlu1 %v363_v11  ;;  %145 = vadd.xlane.f32.xlu0 %v365_v12  ;;  %v64_v19 = vmul.f32 1.442695, %v58_v14  ;;  %v70_v37 = vmax.f32 %v324_v1, 0.0  ;;  %v68_v43 = vmax.f32 %v329_v2, 0.0  ;;  %v72_v44 = vmul.f32 %v365_v12, %v329_v2  ;;  %24 = vst.msk [vmem:[%s628_s3] sm:$0xff] %vm19_vm0, %v287_v3  ;;  %26 = vst.msk [vmem:[%s628_s3 + $0x10] sm:$0xff] %vm19_vm0, %v287_v3 }
   0x7   :  { %v60_v20 = vmul.f32 1.442695, %v56_v15  ;;  %v57_v23 = vsub.f32 0.0, %v53_v18  ;;  %v66_v24 = vmul.f32 1.442695, %v59_v21  ;;  %v74_v38 = vmul.f32 %v373_v22, %v324_v1  ;;  %27 = vst.msk [vmem:[%s628_s3 + $0x18] sm:$0xff] %vm19_vm0, %v287_v3 }
   0x8   :  { %263 = vpow2.f32 %v64_v19  ;;  %v71_v47 = vmax.f32 %v354_v7, 0.0  ;;  %v75_v48 = vmul.f32 %v370_v17, %v354_v7  ;;  %v69_v52 = vmax.f32 %v361_v10, 0.0  ;;  %21 = vst.msk [vmem:[%s629_s2 + $0x8] sm:$0xff] %vm19_vm0, %v287_v3  ;;  %20 = vst.msk [vmem:[%s629_s2] sm:$0xff] %vm19_vm0, %v287_v3 }
   0x9   :  { %265 = vpow2.f32 %v60_v20  ;;  %v62_v25 = vmul.f32 1.442695, %v57_v23  ;;  %v78_v50 = vsub.f32 %v70_v37, %v74_v38  ;;  %v73_v57 = vmul.f32 %v363_v11, %v361_v10  ;;  %22 = vst.msk [vmem:[%s629_s2 + $0x10] sm:$0xff] %vm19_vm0, %v287_v3  ;;  %23 = vst.msk [vmem:[%s629_s2 + $0x18] sm:$0xff] %vm19_vm0, %v287_v3  ;;  %v143_v3 = vld [vmem:[%s626_s4 + $0x10] sm:$0xff] }
   0xa   :  { %151 = vadd.xlane.f32.xlu1 %v370_v17  ;;  %149 = vadd.xlane.f32.xlu0 %v373_v22  ;;  %267 = vpow2.f32 %v66_v24  ;;  %v76_v61 = vsub.f32 %v68_v43, %v72_v44  ;;  %v79_v4 = vsub.f32 %v71_v47, %v75_v48  ;;  %vm182_vm5 = vcmp.ge.f32.partialorder %v361_v10, 0.0 }
   0xb   :  { %269 = vpow2.f32 %v62_v25  ;;  %v77_v15 = vsub.f32 %v69_v52, %v73_v57  ;;  %vm181_vm6 = vcmp.ge.f32.partialorder %v329_v2, 0.0  ;;  %vm184_vm7 = vcmp.ge.f32.partialorder %v354_v7, 0.0  ;;  %v120_v57 = vld [vmem:[%s627_s5] sm:$0xff] }
   0xc   :  { %vm183_vm8 = vcmp.ge.f32.partialorder %v324_v1, 0.0 }
  0x15   :  { %v377_v26 = vpop.eup %263 }
  0x16   :  { %v379_v27 = vpop.eup %265  ;;  %v382_v28 = vadd.f32 1.0, %v377_v26  ;;  %v101_v34 = vmul.f32 -0.5, %v377_v26  ;;  %v104_v41 = vand.u32 2147483647, %v377_v26  ;;  %v187_v7 = vsel %vm183_vm8, 1.0, %v377_v26 }
  0x17   :  { %v404_v29 = vpop.eup %267  ;;  %v407_v30 = vadd.f32 1.0, %v379_v27  ;;  %v83_v35 = vmul.f32 -0.5, %v379_v27  ;;  %v86_v45 = vand.u32 2147483647, %v379_v27 }
  0x18   :  { %v409_v31 = vpop.eup %269  ;;  %271 = vlog2.f32 %v382_v28  ;;  %v413_v32 = vadd.f32 1.0, %v404_v29  ;;  %v110_v36 = vmul.f32 -0.5, %v404_v29  ;;  %v102_v39 = vadd.f32 1.0, %v101_v34 }
  0x19   :  { %273 = vlog2.f32 %v407_v30  ;;  %v89_v33 = vadd.f32 1.0, %v409_v31  ;;  %v92_v40 = vmul.f32 -0.5, %v409_v31  ;;  %v84_v42 = vadd.f32 1.0, %v83_v35 }
  0x1a   :  { %275 = vlog2.f32 %v413_v32  ;;  %v111_v46 = vadd.f32 1.0, %v110_v36  ;;  %v113_v49 = vand.u32 2147483647, %v404_v29  ;;  %v103_v51 = vmul.f32 %v377_v26, %v102_v39 }
  0x1b   :  { %277 = vlog2.f32 %v89_v33  ;;  %v93_v53 = vadd.f32 1.0, %v92_v40  ;;  %vm439_vm1 = vcmp.lt.f32.partialorder %v104_v41, 0.0004427343  ;;  %v85_v56 = vmul.f32 %v379_v27, %v84_v42 }
  0x1c   :  { %279 = vrcp.f32 %v89_v33  ;;  %v95_v58 = vand.u32 2147483647, %v409_v31  ;;  %vm87_vm2 = vcmp.lt.f32.partialorder %v86_v45, 0.0004427343  ;;  %v112_v62 = vmul.f32 %v404_v29, %v111_v46 }
  0x1d   :  { %281 = vrcp.f32 %v407_v30  ;;  %vm114_vm3 = vcmp.lt.f32.partialorder %v113_v49, 0.0004427343  ;;  %v94_v8 = vmul.f32 %v409_v31, %v93_v53  ;;  %v188_v44 = vsel %vm184_vm7, 1.0, %v404_v29 }
  0x1e   :  { %283 = vrcp.f32 %v413_v32  ;;  %vm451_vm4 = vcmp.lt.f32.partialorder %v95_v58, 0.0004427343 }
  0x1f   :  { %285 = vrcp.f32 %v382_v28 }
  0x25   :  { %v272_v54 = vpop.eup %271 }
  0x26   :  { %v274_v59 = vpop.eup %273  ;;  %v100_v60 = vmul.f32 0.6931472, %v272_v54 }
  0x27   :  { %v276_v63 = vpop.eup %275  ;;  %v82_v0 = vmul.f32 0.6931472, %v274_v59 }
  0x28   :  { %v106_v5 = vsel %vm439_vm1, %v103_v51, %v100_v60  ;;  %v109_v6 = vmul.f32 0.6931472, %v276_v63  ;;  %v278_v9 = vpop.eup %277  ;;  %v144_v51 = vld [vmem:[%s626_s4 + $0x18] sm:$0xff]  ;;  %v121_v63 = vld [vmem:[%s627_s5 + $0x8] sm:$0xff] }
  0x29   :  { %v118_v13 = vadd.f32 %v106_v5, %v78_v50  ;;  %v88_v14 = vsel %vm87_vm2, %v85_v56, %v82_v0  ;;  %v280_v18 = vpop.eup %279  ;;  %v91_v21 = vmul.f32 0.6931472, %v278_v9  ;;  %v122_v56 = vld [vmem:[%s627_s5 + $0x10] sm:$0xff]  ;;  %v193_v9 = vld [vmem:[%s628_s3] sm:$0xff] }
  0x2a   :  { %v116_v19 = vadd.f32 %v88_v14, %v76_v61  ;;  %v115_v20 = vsel %vm114_vm3, %v112_v62, %v109_v6  ;;  %v282_v23 = vpop.eup %281  ;;  %v170_v25 = vmul.f32 %v280_v18, %v89_v33  ;;  %v186_v33 = vsel %vm182_vm5, 1.0, %v409_v31  ;;  %v123_v62 = vld [vmem:[%s627_s5 + $0x18] sm:$0xff] }
  0x2b   :  { %128 = vadd.xlane.f32.xlu1 %v118_v13  ;;  %v119_v24 = vadd.f32 %v115_v20, %v79_v4  ;;  %v284_v34 = vpop.eup %283  ;;  %v97_v35 = vsel %vm451_vm4, %v94_v8, %v91_v21  ;;  %v169_v36 = vmul.f32 %v282_v23, %v407_v30  ;;  %v185_v30 = vsel %vm181_vm6, 1.0, %v379_v27  ;;  %v194_v8 = vld [vmem:[%s628_s3 + $0x8] sm:$0xff] }
  0x2c   :  { %124 = vadd.xlane.f32.xlu0 %v116_v19  ;;  %v286_v37 = vpop.eup %285  ;;  %v117_v38 = vadd.f32 %v97_v35, %v77_v15  ;;  %v174_v39 = vsub.f32 2.0, %v170_v25  ;;  %v172_v40 = vmul.f32 %v284_v34, %v413_v32  ;;  %v195_v19 = vld [vmem:[%s628_s3 + $0x10] sm:$0xff]  ;;  %v214_v25 = vld [vmem:[%s629_s2 + $0x8] sm:$0xff] }
  0x2d   :  { %v173_v41 = vsub.f32 2.0, %v169_v36  ;;  %v171_v10 = vmul.f32 %v286_v37, %v382_v28 }
  0x2e   :  { %v178_v42 = vmul.f32 %v280_v18, %v174_v39  ;;  %v176_v43 = vsub.f32 2.0, %v172_v40  ;;  %v196_v18 = vld [vmem:[%s628_s3 + $0x18] sm:$0xff]  ;;  %v215_v40 = vld [vmem:[%s629_s2 + $0x10] sm:$0xff] }
  0x2f   :  { %130 = vadd.xlane.f32.xlu1 %v119_v24  ;;  %v177_v2 = vmul.f32 %v282_v23, %v173_v41  ;;  %v175_v45 = vsub.f32 2.0, %v171_v10  ;;  %v216_v39 = vld [vmem:[%s629_s2 + $0x18] sm:$0xff] }
  0x30   :  { %126 = vadd.xlane.f32.xlu0 %v117_v38  ;;  %v190_v32 = vmul.f32 %v186_v33, %v178_v42  ;;  %v180_v46 = vmul.f32 %v284_v34, %v176_v43  ;;  %v213_v34 = vld [vmem:[%s629_s2] sm:$0xff] }
  0x31   :  { %v189_v31 = vmul.f32 %v185_v30, %v177_v2  ;;  %v179_v47 = vmul.f32 %v286_v37, %v175_v45 }
  0x32   :  { %v192_v28 = vmul.f32 %v188_v44, %v180_v46  ;;  %v218_v26 = vmul.f32 %v190_v32, %v363_v11  ;;  %v142_v11 = vld [vmem:[%s626_s4 + $0x8] sm:$0xff] }
  0x33   :  { %199 = vadd.xlane.f32.xlu1 %v190_v32  ;;  %v191_v1 = vmul.f32 %v187_v7, %v179_v47  ;;  %v217_v27 = vmul.f32 %v189_v31, %v365_v12  ;;  %v141_v12 = vld [vmem:[%s626_s4] sm:$0xff] }
  0x34   :  { %197 = vadd.xlane.f32.xlu0 %v189_v31  ;;  %v220_v29 = vmul.f32 %v192_v28, %v370_v17 }
  0x35   :  { %v219_v48 = vmul.f32 %v191_v1, %v373_v22 }
  0x37   :  { %203 = vadd.xlane.f32.xlu1 %v192_v28 }
  0x38   :  { %201 = vadd.xlane.f32.xlu0 %v191_v1 }
  0x3b   :  { %223 = vadd.xlane.f32.xlu1 %v218_v26 }
  0x3c   :  { %221 = vadd.xlane.f32.xlu0 %v217_v27 }
  0x3f   :  { %227 = vadd.xlane.f32.xlu1 %v220_v29 }
  0x40   :  { %225 = vadd.xlane.f32.xlu0 %v219_v48 }
  0x8f   :  { %v148_v17 = vpop.xlane.xlu1 %147  ;;  %v146_v22 = vpop.xlane.xlu0 %145 }
  0x90   :  { %v154_v49 = vadd.f32 %v148_v17, %v142_v11  ;;  %v153_v50 = vadd.f32 %v146_v22, %v141_v12 }
  0x92   :  { %158 = vst.msk [vmem:[%s626_s4 + $0x8] sm:$0xff] %vm19_vm0, %v154_v49  ;;  %157 = vst.msk [vmem:[%s626_s4] sm:$0xff] %vm19_vm0, %v153_v50 }
  0x93   :  { %v152_v52 = vpop.xlane.xlu1 %151  ;;  %v150_v53 = vpop.xlane.xlu0 %149 }
  0x94   :  { %v156_v54 = vadd.f32 %v152_v52, %v144_v51  ;;  %v155_v55 = vadd.f32 %v150_v53, %v143_v3 }
  0x96   :  { %160 = vst.msk [vmem:[%s626_s4 + $0x18] sm:$0xff] %vm19_vm0, %v156_v54  ;;  %159 = vst.msk [vmem:[%s626_s4 + $0x10] sm:$0xff] %vm19_vm0, %v155_v55 }
  0xb4   :  { %v129_v58 = vpop.xlane.xlu1 %128 }
  0xb5   :  { %v134_v59 = vadd.f32 %v129_v58, %v122_v56  ;;  %v125_v60 = vpop.xlane.xlu0 %124 }
  0xb6   :  { %v132_v61 = vadd.f32 %v125_v60, %v120_v57 }
  0xb7   :  { %139 = vst.msk [vmem:[%s627_s5 + $0x10] sm:$0xff] %vm19_vm0, %v134_v59 }
  0xb8   :  { %137 = vst.msk [vmem:[%s627_s5] sm:$0xff] %vm19_vm0, %v132_v61  ;;  %v131_v0 = vpop.xlane.xlu1 %130 }
  0xb9   :  { %v135_v4 = vadd.f32 %v131_v0, %v123_v62  ;;  %v127_v5 = vpop.xlane.xlu0 %126 }
  0xba   :  { %v133_v6 = vadd.f32 %v127_v5, %v121_v63 }
  0xbb   :  { %140 = vst.msk [vmem:[%s627_s5 + $0x18] sm:$0xff] %vm19_vm0, %v135_v4 }
  0xbc   :  { %138 = vst.msk [vmem:[%s627_s5 + $0x8] sm:$0xff] %vm19_vm0, %v133_v6  ;;  %v200_v13 = vpop.xlane.xlu1 %199 }
  0xbd   :  { %v206_v14 = vadd.f32 %v200_v13, %v194_v8  ;;  %v198_v15 = vpop.xlane.xlu0 %197 }
  0xbe   :  { %v205_v16 = vadd.f32 %v198_v15, %v193_v9 }
  0xbf   :  { %210 = vst.msk [vmem:[%s628_s3 + $0x8] sm:$0xff] %vm19_vm0, %v206_v14 }
  0xc0   :  { %209 = vst.msk [vmem:[%s628_s3] sm:$0xff] %vm19_vm0, %v205_v16  ;;  %v204_v20 = vpop.xlane.xlu1 %203 }
  0xc1   :  { %v208_v21 = vadd.f32 %v204_v20, %v196_v18  ;;  %v202_v23 = vpop.xlane.xlu0 %201 }
  0xc2   :  { %v207_v24 = vadd.f32 %v202_v23, %v195_v19 }
  0xc3   :  { %212 = vst.msk [vmem:[%s628_s3 + $0x18] sm:$0xff] %vm19_vm0, %v208_v21 }
  0xc4   :  { %211 = vst.msk [vmem:[%s628_s3 + $0x10] sm:$0xff] %vm19_vm0, %v207_v24  ;;  %v224_v35 = vpop.xlane.xlu1 %223 }
  0xc5   :  { %v230_v36 = vadd.f32 %v224_v35, %v214_v25  ;;  %v222_v37 = vpop.xlane.xlu0 %221 }
  0xc6   :  { %v229_v38 = vadd.f32 %v222_v37, %v213_v34 }
  0xc7   :  { %234 = vst.msk [vmem:[%s629_s2 + $0x8] sm:$0xff] %vm19_vm0, %v230_v36 }
  0xc8   :  { %233 = vst.msk [vmem:[%s629_s2] sm:$0xff] %vm19_vm0, %v229_v38  ;;  %v228_v33 = vpop.xlane.xlu1 %227 }
  0xc9   :  { %v232_v41 = vadd.f32 %v228_v33, %v216_v39  ;;  %v226_v10 = vpop.xlane.xlu0 %225 }
  0xca   :  { %v231_v42 = vadd.f32 %v226_v10, %v215_v40 }
  0xcb   :  { %236 = vst.msk [vmem:[%s629_s2 + $0x18] sm:$0xff] %vm19_vm0, %v232_v41 }
  0xcc   :  { %235 = vst.msk [vmem:[%s629_s2 + $0x10] sm:$0xff] %vm19_vm0, %v231_v42 }

</bundles_post_ra>
